<compile_context>
chip_gen: v7x
topology: tpu7x:2x2x1
jax: 0.10.0
libtpu: 0.0.40
codegen_flags: <defaults>
</compile_context>

<pallas_src>
import math

import jax
import jax.numpy as jnp
from jax.experimental import pallas as pl
from jax.experimental.pallas import tpu as pltpu


_NEG = -1e30  # "minus infinity" bias for padded logit columns (exp underflows to 0)
              # NOTE: requires f32 logits/bias; in bf16 this would become -inf
              # and produce NaN after the max-subtraction.


def _round_up(x, m):
    return ((x + m - 1) // m) * m


# ---------------------------------------------------------------------------
# Kernel
# ---------------------------------------------------------------------------
def qnet_kernel(x_ref, w1_ref, b1_ref, w2_ref, b2_ref, o_ref, xpad_ref):
    tile, ni = x_ref.shape

    # Stage the raw (tile, num_inputs) block into a lane-aligned (tile, 128)
    # VMEM buffer: zeros everywhere, real features in lanes [0, ni).  This is
    # re-done every grid step (stateless), so it is safe under "parallel"
    # grid semantics / v7x megacore sharding.
    xpad_ref[...] = jnp.zeros_like(xpad_ref)
    xpad_ref[:, :ni] = x_ref[...]

    # fc_1 on the MXU (f32 in, f32 accumulate); bias + ReLU on the VPU.
    h = jnp.dot(xpad_ref[...], w1_ref[...], preferred_element_type=jnp.float32)
    h = jnp.maximum(h + b1_ref[...], 0.0)

    # fc_2: (tile, 128) x (128, 8) -> narrow 8-wide logits slab.
    logits = jnp.dot(h, w2_ref[...], preferred_element_type=jnp.float32)
    logits = logits + b2_ref[...]        # padded columns get -1e30 -> exp == 0

    # Numerically stable softmax over the 8-wide slab; exact divide
    # (the kernel is memory-bound, so the exact reciprocal is free).
    m = jnp.max(logits, axis=-1, keepdims=True)
    e = jnp.exp(logits - m)
    denom = jnp.sum(e, axis=-1, keepdims=True)
    o_ref[...] = (e / denom).astype(o_ref.dtype)


# ---------------------------------------------------------------------------
# Wrapper
# ---------------------------------------------------------------------------
def qnet_forward(x, w1p, b1p, w2p, b2p, num_outputs, *,
                 max_tile_batch=4096, megacore_min_rows=2048):
    """x: (B, num_inputs) f32.  w*/b* are the *padded* params from pad_params."""
    B, ni = x.shape
    IP, HP = w1p.shape
    HP2, OP = w2p.shape
    assert HP2 == HP and b1p.shape == (1, HP) and b2p.shape == (1, OP)
    assert num_outputs <= OP
    # -1e30 pad-bias trick is only exact with f32 bias/logit accumulation.
    assert b2p.dtype == jnp.float32

    x = x.astype(jnp.float32)

    # Tile selection:
    #   * single grid step whenever the batch fits one tile (v5e/v6e: any extra
    #     step is pure ~0.35 us overhead on a single TensorCore),
    #   * split into >=2 steps of >=1024 rows only for large batches so v7x
    #     megacore can shard the "parallel" batch axis,
    #   * cap the tile at max_tile_batch rows (VMEM stays ~5 MiB at 4096).
    b8 = _round_up(max(B, 1), 8)
    if B >= megacore_min_rows:
        half = _round_up((b8 + 1) // 2, 8)
        tile = min(max_tile_batch, max(1024, half))
    else:
        tile = min(max_tile_batch, b8)
    grid = (pl.cdiv(B, tile),)

    out = pl.pallas_call(
        qnet_kernel,
        out_shape=jax.ShapeDtypeStruct((B, OP), jnp.float32),
        grid_spec=pltpu.PrefetchScalarGridSpec(
            num_scalar_prefetch=0,
            grid=grid,
            in_specs=[
                # raw, unpadded input: last dim == full array dim (4).
                pl.BlockSpec((tile, ni), lambda i: (i, 0)),
                # weights / biases: constant index_maps -> VMEM-resident.
                pl.BlockSpec((IP, HP), lambda i: (0, 0)),
                pl.BlockSpec((1, HP), lambda i: (0, 0)),
                pl.BlockSpec((HP, OP), lambda i: (0, 0)),
                pl.BlockSpec((1, OP), lambda i: (0, 0)),
            ],
            out_specs=pl.BlockSpec((tile, OP), lambda i: (i, 0)),
            scratch_shapes=[pltpu.VMEM((tile, IP), jnp.float32)],  # staged x
        ),
        compiler_params=pltpu.CompilerParams(
            dimension_semantics=("parallel",),
        ),
    )(x, w1p, b1p, w2p, b2p)

    # Rows past B (partial last block) were never written / are garbage only
    # in positions that don't exist in `out`; just drop the padded columns.
    return out[:, :num_outputs]


# ---------------------------------------------------------------------------
# Parameter construction (torch-equivalent init) + one-time padding
# ---------------------------------------------------------------------------
def init_params(key, num_inputs, num_outputs, num_size):
    """Matches nn.Linear + xavier_uniform_; weights stored as (in, out)."""
    k1, k2, k3, k4 = jax.random.split(key, 4)

    def xavier_uniform(k, fan_in, fan_out):
        limit = math.sqrt(6.0 / (fan_in + fan_out))
        return jax.random.uniform(k, (fan_in, fan_out), jnp.float32, -limit, limit)

    w1 = xavier_uniform(k1, num_inputs, num_size)
    b1 = jax.random.uniform(k2, (1, num_size), jnp.float32,
                            -1.0 / math.sqrt(num_inputs), 1.0 / math.sqrt(num_inputs))
    w2 = xavier_uniform(k3, num_size, num_outputs)
    b2 = jax.random.uniform(k4, (1, num_outputs), jnp.float32,
                            -1.0 / math.sqrt(num_size), 1.0 / math.sqrt(num_size))
    return w1, b1, w2, b2


def pad_params(w1, b1, w2, b2, *, lane=128, out_pad=8):
    """One-time zero-padding of the feature dims.

    * input/hidden dims pad to 128 lanes (MXU-friendly, zero-exact),
    * the OUTPUT dim pads only to 8 columns (narrow writeback slab),
    * padded logit columns get a -1e30 f32 bias so softmax ignores them exactly.
    """
    num_inputs, hidden = w1.shape
    hidden2, num_outputs = w2.shape
    assert hidden2 == hidden
    IP = _round_up(num_inputs, lane)
    HP = _round_up(hidden, lane)
    OP = _round_up(num_outputs, out_pad)

    w1p = jnp.zeros((IP, HP), jnp.float32).at[:num_inputs, :hidden].set(w1)
    b1p = jnp.zeros((1, HP), jnp.float32).at[:, :hidden].set(b1)
    w2p = jnp.zeros((HP, OP), jnp.float32).at[:hidden, :num_outputs].set(w2)
    b2p = jnp.full((1, OP), _NEG, jnp.float32).at[:, :num_outputs].set(b2)
    return w1p, b1p, w2p, b2p


# ---------------------------------------------------------------------------
# Reference (pure JAX, f32, highest matmul precision)
# ---------------------------------------------------------------------------
def qnet_reference(x, w1, b1, w2, b2):
    hi = jax.lax.Precision.HIGHEST
    h = jnp.maximum(jnp.dot(x, w1, precision=hi) + b1, 0.0)
    logits = jnp.dot(h, w2, precision=hi) + b2
    return jax.nn.softmax(logits, axis=-1)


# ---------------------------------------------------------------------------
if __name__ == "__main__":
    # CartPole-like sizes: state=4, actions=2, hidden=32.
    num_inputs, num_outputs, num_size = 4, 2, 32

    key = jax.random.PRNGKey(0)
    kp, kx1, kx2, kx3 = jax.random.split(key, 4)

    w1, b1, w2, b2 = init_params(kp, num_inputs, num_outputs, num_size)
    w1p, b1p, w2p, b2p = pad_params(w1, b1, w2, b2)

    # batch=8:  single exact tile.
    # batch=50: single tile with a partial (boundary) block.
    # batch=2500: 2-step grid (megacore-splittable) with a partial last block.
    for batch, kk in ((8, kx1), (50, kx2), (2500, kx3)):
        x = jax.random.normal(kk, (batch, num_inputs), jnp.float32)

        out = jax.block_until_ready(
            qnet_forward(x, w1p, b1p, w2p, b2p, num_outputs))

        assert out.shape == (batch, num_outputs)

        ref = qnet_reference(x, w1, b1, w2, b2)
        # All-f32 kernel with exact softmax divide: only matmul accumulation
        # order / MXU f32 pass precision differs from the reference.
        assert jnp.allclose(out, ref, atol=5e-3), "mismatch vs f32 reference"
        assert jnp.allclose(jnp.sum(out, axis=-1), 1.0, atol=1e-5), \
            "softmax rows must sum to 1"

    print("KERNEL_OK")
</pallas_src>

<mosaic_0001>
module attributes {stable_mosaic.version = 11 : i64} {
  func.func @qnet_kernel(%arg0: i32, %arg1: memref<8x4xf32, #tpu.memory_space<vmem>>, %arg2: memref<128x128xf32, #tpu.memory_space<vmem>>, %arg3: memref<1x128xf32, #tpu.memory_space<vmem>>, %arg4: memref<128x8xf32, #tpu.memory_space<vmem>>, %arg5: memref<1x8xf32, #tpu.memory_space<vmem>>, %arg6: memref<8x8xf32, #tpu.memory_space<vmem>>, %arg7: memref<8x128xf32, #tpu.memory_space<vmem>>) attributes {dimension_semantics = [#tpu.dimension_semantics<parallel>], iteration_bounds = array<i64: 1>, scalar_prefetch = 0 : i64, scratch_operands = 1 : i64, tpu.core_type = #tpu.core_type<tc>, window_params = [{transform_indices = @transform_0, window_bounds = array<i64: 8, 4>}, {pipeline_mode = #tpu.pipeline_mode<synchronous>, transform_indices = @transform_1, window_bounds = array<i64: 128, 128>}, {pipeline_mode = #tpu.pipeline_mode<synchronous>, transform_indices = @transform_2, window_bounds = array<i64: 1, 128>}, {pipeline_mode = #tpu.pipeline_mode<synchronous>, transform_indices = @transform_3, window_bounds = array<i64: 128, 8>}, {pipeline_mode = #tpu.pipeline_mode<synchronous>, transform_indices = @transform_4, window_bounds = array<i64: 1, 8>}, {transform_indices = @transform_5, window_bounds = array<i64: 8, 8>}]} {
    %cst = arith.constant 0.000000e+00 : f32
    %0 = vector.broadcast %cst : f32 to vector<8x128xf32>
    %c0 = arith.constant 0 : index
    %c0_0 = arith.constant 0 : index
    %1 = vector.load %arg7[%c0, %c0_0] : memref<8x128xf32, #tpu.memory_space<vmem>>, vector<8x128xf32>
    tpu.vector_store %arg7[%c0, %c0_0], %0 {strides = array<i32>} : memref<8x128xf32, #tpu.memory_space<vmem>>, vector<8x128xf32>,
    %c0_1 = arith.constant 0 : index
    %c0_2 = arith.constant 0 : index
    %2 = vector.load %arg1[%c0_1, %c0_2] : memref<8x4xf32, #tpu.memory_space<vmem>>, vector<8x4xf32>
    %c0_3 = arith.constant 0 : index
    %c0_4 = arith.constant 0 : index
    %3 = vector.load %arg7[%c0_3, %c0_4] : memref<8x128xf32, #tpu.memory_space<vmem>>, vector<8x4xf32>
    tpu.vector_store %arg7[%c0_3, %c0_4], %2 {strides = array<i32>} : memref<8x128xf32, #tpu.memory_space<vmem>>, vector<8x4xf32>,
    %c0_5 = arith.constant 0 : index
    %c0_6 = arith.constant 0 : index
    %4 = vector.load %arg7[%c0_5, %c0_6] : memref<8x128xf32, #tpu.memory_space<vmem>>, vector<8x128xf32>
    %c0_7 = arith.constant 0 : index
    %c0_8 = arith.constant 0 : index
    %5 = vector.load %arg2[%c0_7, %c0_8] : memref<128x128xf32, #tpu.memory_space<vmem>>, vector<128x128xf32>
    %cst_9 = arith.constant dense<0.000000e+00> : vector<8x128xf32>
    %6 = tpu.matmul %4, %5, %cst_9 {dimension_numbers = #tpu.dot_dimension_numbers<[1], [0], [0], [1], [0, 0, 1, 1], [], []>} : vector<8x128xf32>, vector<128x128xf32>, vector<8x128xf32> -> vector<8x128xf32>
    %c0_10 = arith.constant 0 : index
    %c0_11 = arith.constant 0 : index
    %7 = vector.load %arg3[%c0_10, %c0_11] : memref<1x128xf32, #tpu.memory_space<vmem>>, vector<1x128xf32>
    %8 = vector.broadcast %7 : vector<1x128xf32> to vector<8x128xf32>
    %9 = arith.addf %6, %8 : vector<8x128xf32>
    %cst_12 = arith.constant 0.000000e+00 : f32
    %10 = vector.broadcast %cst_12 : f32 to vector<8x128xf32>
    %11 = arith.maximumf %9, %10 : vector<8x128xf32>
    %c0_13 = arith.constant 0 : index
    %c0_14 = arith.constant 0 : index
    %12 = vector.load %arg4[%c0_13, %c0_14] : memref<128x8xf32, #tpu.memory_space<vmem>>, vector<128x8xf32>
    %cst_15 = arith.constant dense<0.000000e+00> : vector<8x8xf32>
    %13 = tpu.matmul %11, %12, %cst_15 {dimension_numbers = #tpu.dot_dimension_numbers<[1], [0], [0], [1], [0, 0, 1, 1], [], []>} : vector<8x128xf32>, vector<128x8xf32>, vector<8x8xf32> -> vector<8x8xf32>
    %c0_16 = arith.constant 0 : index
    %c0_17 = arith.constant 0 : index
    %14 = vector.load %arg5[%c0_16, %c0_17] : memref<1x8xf32, #tpu.memory_space<vmem>>, vector<1x8xf32>
    %15 = vector.broadcast %14 : vector<1x8xf32> to vector<8x8xf32>
    %16 = arith.addf %13, %15 : vector<8x8xf32>
    %cst_18 = arith.constant dense<0xFF800000> : vector<8xf32>
    %17 = vector.multi_reduction <maximumf>, %16, %cst_18 [1] : vector<8x8xf32> to vector<8xf32>
    %18 = vector.shape_cast %17 : vector<8xf32> to vector<8x1xf32>
    %19 = vector.broadcast %18 : vector<8x1xf32> to vector<8x8xf32>
    %20 = arith.subf %16, %19 : vector<8x8xf32>
    %21 = math.exp %20 : vector<8x8xf32>
    %cst_19 = arith.constant dense<0.000000e+00> : vector<8xf32>
    %22 = vector.multi_reduction <add>, %21, %cst_19 [1] : vector<8x8xf32> to vector<8xf32>
    %23 = vector.shape_cast %22 : vector<8xf32> to vector<8x1xf32>
    %24 = vector.broadcast %23 : vector<8x1xf32> to vector<8x8xf32>
    %25 = arith.divf %21, %24 : vector<8x8xf32>
    %c0_20 = arith.constant 0 : index
    %c0_21 = arith.constant 0 : index
    %26 = vector.load %arg6[%c0_20, %c0_21] : memref<8x8xf32, #tpu.memory_space<vmem>>, vector<8x8xf32>
    tpu.vector_store %arg6[%c0_20, %c0_21], %25 {strides = array<i32>} : memref<8x8xf32, #tpu.memory_space<vmem>>, vector<8x8xf32>,
    return
  }
  func.func @transform_0(%arg0: i32) -> (i32, i32) {
    %c0_i32 = arith.constant 0 : i32
    %c0_i32_0 = arith.constant 0 : i32
    return %arg0, %c0_i32 : i32, i32
  }
  func.func @transform_1(%arg0: i32) -> (i32, i32) {
    %c0_i32 = arith.constant 0 : i32
    %c0_i32_0 = arith.constant 0 : i32
    %c0_i32_1 = arith.constant 0 : i32
    return %c0_i32, %c0_i32_0 : i32, i32
  }
  func.func @transform_2(%arg0: i32) -> (i32, i32) {
    %c0_i32 = arith.constant 0 : i32
    %c0_i32_0 = arith.constant 0 : i32
    %c0_i32_1 = arith.constant 0 : i32
    return %c0_i32, %c0_i32_0 : i32, i32
  }
  func.func @transform_3(%arg0: i32) -> (i32, i32) {
    %c0_i32 = arith.constant 0 : i32
    %c0_i32_0 = arith.constant 0 : i32
    %c0_i32_1 = arith.constant 0 : i32
    return %c0_i32, %c0_i32_0 : i32, i32
  }
  func.func @transform_4(%arg0: i32) -> (i32, i32) {
    %c0_i32 = arith.constant 0 : i32
    %c0_i32_0 = arith.constant 0 : i32
    %c0_i32_1 = arith.constant 0 : i32
    return %c0_i32, %c0_i32_0 : i32, i32
  }
  func.func @transform_5(%arg0: i32) -> (i32, i32) {
    %c0_i32 = arith.constant 0 : i32
    %c0_i32_0 = arith.constant 0 : i32
    return %arg0, %c0_i32 : i32, i32
  }
}

</mosaic_0001>

<bundles_post_ra>
// kernel: tpu_custom_call.1
= control target key start
LH: loop header
LB: loop body
LE: loop exit
PB: predicated region body
PF: predicated region fallthrough
CT: control target
= control target key end

     0   :  { %v426_v3 = vmov 0.0|0.0   ;;  %v427_v6 = vmov 0.0   ;;  %vm428_vm0 = vmmov 0   ;;  %vm23_vm1 = vcmask 31744   ;;  %s596_s0 = inlined_call_operand.vmem [shape: f32[8,4], index: 0, kind: input, shape index: {}]   ;;  %s597_s1 = inlined_call_operand.vmem [shape: f32[128,128], index: 1, kind: input, shape index: {}]   ;;  %s598_s2 = inlined_call_operand.vmem [shape: f32[1,128], index: 2, kind: input, shape index: {}]   ;;  %s599_s3 = inlined_call_operand.vmem [shape: f32[128,8], index: 3, kind: input, shape index: {}]   ;;  %s600_s4 = inlined_call_operand.vmem [shape: f32[1,8], index: 4, kind: input, shape index: {}]   ;;  %s601_s5 = inlined_call_operand.hbm [shape: f32[8,8], index: 5, kind: output, shape index: {}]  }
   0x1   :  { %v26_v0 = vld [vmem:[%s597_s1] sm:$0xff]  ;;  %v27_v1 = vld [vmem:[%s597_s1 + $0x8] sm:$0xff]  ;;  %v28_v2 = vld [vmem:[%s597_s1 + $0x10] sm:$0xff]  ;;  %346 = vmatprep.subr.bf16.mxu0 %v426_v3  ;;  %21 = vst [vmem:[#allocation2] sm:$0xff] %v427_v6  ;;  %370 = vmatprep.subr.bf16.mxu1 %v426_v3 }
   0x2   :  { %v347_v4 = vpack.c.bf16 %v27_v1, %v26_v0  ;;  %v29_v5 = vld [vmem:[%s597_s1 + $0x18] sm:$0xff]  ;;  %308 = vmatprep.mubr.msk.f32.mxu0 %vm428_vm0, %v427_v6  ;;  %343 = vmatprep.mubr.msk.f32.mxu1 %vm428_vm0, %v427_v6  ;;  %v30_v8 = vld [vmem:[%s597_s1 + $0x20] sm:$0xff]  ;;  %v31_v9 = vld [vmem:[%s597_s1 + $0x28] sm:$0xff] }
   0x3   :  { %v350_v7 = vpack.c.bf16 %v29_v5, %v28_v2  ;;  %v22_v10 = vld [vmem:[%s596_s0] sm:$0xff]  ;;  %v121_v12 = vld [vmem:[%s599_s3 + $0x8] sm:$0xff]  ;;  %v122_v13 = vld [vmem:[%s599_s3 + $0x10] sm:$0xff]  ;;  %v353_v15 = vpack.c.bf16 %v31_v9, %v30_v8 }
   0x4   :  { %348 = vmatpush3.bf16.msra.mxu0 %v347_v4  ;;  %v120_v11 = vld [vmem:[%s599_s3] sm:$0xff]  ;;  %24 = vst.msk [vmem:[#allocation2] sm:$0xff] %vm23_vm1, %v22_v10  ;;  %v123_v14 = vld [vmem:[%s599_s3 + $0x18] sm:$0xff]  ;;  %v32_v17 = vld [vmem:[%s597_s1 + $0x30] sm:$0xff] }
   0x5   :  { %349 = vmatprep.subr.bf16.mxu0 %v426_v3  ;;  %v371_v16 = vpack.c.bf16 %v121_v12, %v120_v11  ;;  %v33_v18 = vld [vmem:[%s597_s1 + $0x38] sm:$0xff]  ;;  %v374_v19 = vpack.c.bf16 %v123_v14, %v122_v13  ;;  %v124_v20 = vld [vmem:[%s599_s3 + $0x20] sm:$0xff]  ;;  %v125_v21 = vld [vmem:[%s599_s3 + $0x28] sm:$0xff] }
   0x7   :  { %372 = vmatpush3.bf16.msra.mxu1 %v371_v16 }
   0x8   :  { %351 = vmatpush3.bf16.msra.mxu0 %v350_v7  ;;  %373 = vmatprep.subr.bf16.mxu1 %v426_v3 }
   0x9   :  { %352 = vmatprep.subr.bf16.mxu0 %v426_v3 }
   0xa   :  { %10 = vsyncpa [#allocation4], 0  ;;  %v356_v22 = vpack.c.bf16 %v33_v18, %v32_v17  ;;  %v34_v23 = vld [vmem:[%s597_s1 + $0x40] sm:$0xff]  ;;  %v35_v24 = vld [vmem:[%s597_s1 + $0x48] sm:$0xff]  ;;  %v377_v25 = vpack.c.bf16 %v125_v21, %v124_v20  ;;  %vm213_vm2 = vcmask 64512  }
   0xb   :  { %375 = vmatpush3.bf16.msra.mxu1 %v374_v19  ;;  %v126_v26 = vld [vmem:[%s599_s3 + $0x30] sm:$0xff]  ;;  %v127_v27 = vld [vmem:[%s599_s3 + $0x38] sm:$0xff]  ;;  %v359_v28 = vpack.c.bf16 %v35_v24, %v34_v23  ;;  %v128_v32 = vld [vmem:[%s599_s3 + $0x40] sm:$0xff] }
   0xc   :  { %354 = vmatpush3.bf16.msra.mxu0 %v353_v15  ;;  %376 = vmatprep.subr.bf16.mxu1 %v426_v3  ;;  %v36_v29 = vld [vmem:[%s597_s1 + $0x50] sm:$0xff]  ;;  %v37_v30 = vld [vmem:[%s597_s1 + $0x58] sm:$0xff]  ;;  %v380_v31 = vpack.c.bf16 %v127_v27, %v126_v26  ;;  %v129_v33 = vld [vmem:[%s599_s3 + $0x48] sm:$0xff] }
   0xd   :  { %355 = vmatprep.subr.bf16.mxu0 %v426_v3  ;;  %v362_v34 = vpack.c.bf16 %v37_v30, %v36_v29  ;;  %v38_v35 = vld [vmem:[%s597_s1 + $0x60] sm:$0xff]  ;;  %v39_v36 = vld [vmem:[%s597_s1 + $0x68] sm:$0xff]  ;;  %v383_v37 = vpack.c.bf16 %v129_v33, %v128_v32  ;;  %v130_v38 = vld [vmem:[%s599_s3 + $0x50] sm:$0xff] }
   0xe   :  { %v131_v39 = vld [vmem:[%s599_s3 + $0x58] sm:$0xff]  ;;  %v365_v40 = vpack.c.bf16 %v39_v36, %v38_v35  ;;  %v40_v41 = vld [vmem:[%s597_s1 + $0x70] sm:$0xff]  ;;  %v132_v44 = vld [vmem:[%s599_s3 + $0x60] sm:$0xff] }
   0xf   :  { %378 = vmatpush3.bf16.msra.mxu1 %v377_v25  ;;  %v41_v42 = vld [vmem:[%s597_s1 + $0x78] sm:$0xff]  ;;  %v386_v43 = vpack.c.bf16 %v131_v39, %v130_v38  ;;  %v133_v45 = vld [vmem:[%s599_s3 + $0x68] sm:$0xff]  ;;  %v25_v48 = vld [vmem:[#allocation2] sm:$0xff] }
  0x10   :  { %357 = vmatpush3.bf16.msra.mxu0 %v356_v22  ;;  %379 = vmatprep.subr.bf16.mxu1 %v426_v3  ;;  %v368_v46 = vpack.c.bf16 %v41_v42, %v40_v41  ;;  %v389_v47 = vpack.c.bf16 %v133_v45, %v132_v44  ;;  %v134_v49 = vld [vmem:[%s599_s3 + $0x70] sm:$0xff]  ;;  %v135_v50 = vld [vmem:[%s599_s3 + $0x78] sm:$0xff]  ;;  %v240_v52 = vld [vmem:[%s598_s2] ss:$0 sm:$0xff]  ;;  %s429_s2 = smov [#allocation3]  }
  0x11   :  { %358 = vmatprep.subr.bf16.mxu0 %v426_v3  ;;  %v392_v51 = vpack.c.bf16 %v135_v50, %v134_v49  ;;  %v241_v57 = vld [vmem:[%s600_s4] ss:$0 sm:$0xff]  ;;  %s232_s3 = sshll.u32 %s429_s2, 4  ;;  %s233_s3 = int_to_ptr.vmem [resolvable:$true] %s232_s3 }
  0x12   :  { %s402_s4 = scalar_lea.vmem %s233_s3, 128  ;;  %p407_p1 = scmp.lt.s32.totalorder %s233_s3, %s233_s3 }
  0x13   :  { %381 = vmatpush3.bf16.msra.mxu1 %v380_v31  ;;  %p403_p0 = scmp.ne.s32.totalorder %s233_s3, %s402_s4  ;;  %p408_p2 = scmp.lt.s32.totalorder %s402_s4, %s402_s4 }
  0x14   :  { %360 = vmatpush3.bf16.msra.mxu0 %v359_v28  ;;  %382 = vmatprep.subr.bf16.mxu1 %v426_v3 }
  0x15   :  { %361 = vmatprep.subr.bf16.mxu0 %v426_v3  ;;  %p409_p3 = por %p408_p2, %p407_p1 }
  0x17   :  { %384 = vmatpush3.bf16.msra.mxu1 %v383_v37  ;;  %p410_p4 = pnand %p409_p3, %p403_p0 }
  0x18   :  { %363 = vmatpush3.bf16.msra.mxu0 %v362_v34  ;;  %385 = vmatprep.subr.bf16.mxu1 %v426_v3 }
  0x19   :  { %364 = vmatprep.subr.bf16.mxu0 %v426_v3 }
  0x1b   :  { %387 = vmatpush3.bf16.msra.mxu1 %v386_v43 }
  0x1c   :  { %366 = vmatpush3.bf16.msra.mxu0 %v365_v40  ;;  %388 = vmatprep.subr.bf16.mxu1 %v426_v3 }
  0x1d   :  { %367 = vmatprep.subr.bf16.mxu0 %v426_v3 }
  0x1f   :  { %390 = vmatpush3.bf16.msra.mxu1 %v389_v47 }
  0x20   :  { %369 = vmatpush3.bf16.msra.mxu0 %v368_v46  ;;  %391 = vmatprep.subr.bf16.mxu1 %v426_v3 }
  0x23   :  { %309 = vmatmul.mubr.f32.vlgmr.msra.gmra.mrb[0].mxu0 %v25_v48  ;;  %393 = vmatpush3.bf16.msra.mxu1 %v392_v51 }
  0xf6   :  { %v115_v53 = vpop.f32.mrb[0].mxu0 }
  0xf7   :  { %v116_v54 = vadd.f32 %v240_v52, %v115_v53  ;;  %v310_v55 = vpop.f32.mrb[1].mxu0 }
  0xf9   :  { %v119_v56 = vmax.f32 %v116_v54, 0.0 }
  0xfb   :  { %344 = vmatmul.mubr.f32.vlgmr.msra.gmra.mrb[0].mxu1 %v119_v56 }
 0x1ce   :  { %v209_v58 = vpop.f32.mrb[0].mxu1 }
 0x1cf   :  { %v210_v59 = vadd.f32 %v241_v57, %v209_v58  ;;  %v345_v60 = vpop.f32.mrb[1].mxu1 }
 0x1d1   :  { %v214_v61 = vsel %vm213_vm2, %v210_v59, -inf }
 0x1d2   :  { %215 = vmax.xlane.f32.xlu0 %v214_v61 }
 0x25f   :  { %v216_v62 = vpop.xlane.xlu0 %215 }
 0x260   :  { %v217_v63 = vsub.f32 %v210_v59, %v216_v62 }
 0x262   :  { %v218_v0 = vmul.f32 1.442695, %v217_v63 }
 0x264   :  { %398 = vpow2.f32 %v218_v0 }
 0x26e   :  { %v399_v1 = vpop.eup %398 }
 0x26f   :  { %v220_v2 = vsel %vm213_vm2, %v399_v1, 0.0 }
 0x270   :  { %221 = vadd.xlane.f32.xlu0 %v220_v2 }
 0x2fd   :  { %v222_v3 = vpop.xlane.xlu0 %221 }
 0x2fe   :  { %400 = vrcp.f32 %v222_v3 }
 0x308   :  { %v401_v4 = vpop.eup %400 }
 0x309   :  { %v224_v5 = vmul.f32 %v401_v4, %v399_v1 }
 0x30b   :  { %225 = vst.msk [vmem:[#allocation3] sm:$0xff] %vm213_vm2, %v224_v5 }
 0x30c   :  { %413 = shalt.err (!%p410_p4)
}
 0x30d   :  { %s414_s12 = scalar_lea.hbm %s601_s5, 128 }
 0x30e   :  { %p415_p5 = scmp.ne.s32.totalorder %s601_s5, %s414_s12  ;;  %p418_p6 = scmp.lt.u32.totalorder %s414_s12, %s601_s5 }
 0x310   :  { %p420_p7 = pnand %p418_p6, %p415_p5 }
 0x312   :  { %423 = shalt.err (!%p420_p7)
}
 0x313   :  { %235 = dma.vmem_to_hbm [thread:$0]  %s233_s3, 128, %s601_s5, [#allocation4]  }
 0x314   :  { %424 = dma.done.wait [#allocation4], 128  }
 0x315   :  { %425 = vsyncadd [#allocation4], 4294967168 }
 0x316   :  { %239 = vsyncpa [#allocation4], 1 }

</bundles_post_ra>
